<compile_context>
chip_gen: v7x
topology: tpu7x:2x2x1
jax: 0.10.0
libtpu: 0.0.40
codegen_flags: <defaults>
</compile_context>

<pallas_src>
import functools
import math

import jax
import jax.numpy as jnp
import numpy as np
from jax.experimental import pallas as pl
from jax.experimental.pallas import tpu as pltpu


def _round_up(n, m):
    return ((n + m - 1) // m) * m


def _pad2(a, rows, cols):
    r, c = a.shape
    return jnp.pad(a, ((0, rows - r), (0, cols - c)))


# ---------------------------------------------------------------------------
# Kernel
# ---------------------------------------------------------------------------
def realae2_kernel(x_ref, wenc_ref, benc_ref, w1_ref, b1_ref, w2_ref, b2_ref,
                   out_ref, acc_ref, *, half_im, max_width,
                   pts_dim, wid_dim, col_dim):
    k = pl.program_id(1)
    nk = pl.num_programs(1)

    @pl.when(k == 0)
    def _():
        acc_ref[...] = jnp.zeros_like(acc_ref)

    # encoder proxy with fused GAP: accumulate the (TB, zp) projection in f32.
    # wenc_ref block was pre-expanded to (TK, zp) and scaled by 1/(H*W).
    acc_ref[...] += jnp.dot(x_ref[...], wenc_ref[...],
                            preferred_element_type=jnp.float32)

    @pl.when(k == nk - 1)
    def _():
        z = acc_ref[...] + benc_ref[...]

        # fused first layers of the three heads: (TB, zp) @ (zp, 3*zp) -> ReLU
        h = jnp.dot(z.astype(jnp.bfloat16), w1_ref[...],
                    preferred_element_type=jnp.float32) + b1_ref[...]
        h = jnp.maximum(h, 0.0)

        # fused (block-diagonal) second layers: (TB, 3*zp) @ (3*zp, out_pad)
        y = jnp.dot(h.astype(jnp.bfloat16), w2_ref[...],
                    preferred_element_type=jnp.float32) + b2_ref[...]

        # per-head activations, selected per lane -> one lane-dense store
        lane = jax.lax.broadcasted_iota(jnp.int32, y.shape, 1)
        pts_v = jnp.tanh(y) * half_im + half_im
        wid_v = (max_width - 1.0) * jax.nn.sigmoid(y) + 1.0
        col_v = jnp.clip(y, 0.0, 1.0)
        out = jnp.where(lane < pts_dim, pts_v,
              jnp.where(lane < pts_dim + wid_dim, wid_v,
              jnp.where(lane < pts_dim + wid_dim + col_dim, col_v, 0.0)))
        out_ref[...] = out


# ---------------------------------------------------------------------------
# Parameter packing (fuse / pad / cast)
# ---------------------------------------------------------------------------
def _pack_params(params, *, HW, Kp, zdim, pts_dim, wid_dim, col_dim):
    zp = _round_up(zdim, 128)
    tot = pts_dim + wid_dim + col_dim
    out_pad = _round_up(tot, 128)

    # encoder: expand over spatial index (channel-major flatten), fold 1/HW,
    # pad the reduction dim to the tiled length Kp.
    wenc_exp = jnp.repeat(params["wenc"] / float(HW), HW, axis=0)   # (C*HW, zdim)
    wenc_exp = _pad2(wenc_exp, Kp, zp).astype(jnp.bfloat16)
    benc = _pad2(params["benc"], 1, zp).astype(jnp.float32)

    # fused head first layer: (zp, 3*zp)
    w1 = jnp.concatenate([_pad2(params["wp1"], zp, zp),
                          _pad2(params["ww1"], zp, zp),
                          _pad2(params["wc1"], zp, zp)],
                         axis=1).astype(jnp.bfloat16)
    b1 = jnp.concatenate([_pad2(params["bp1"], 1, zp),
                          _pad2(params["bw1"], 1, zp),
                          _pad2(params["bc1"], 1, zp)],
                         axis=1).astype(jnp.float32)

    # fused head second layer: block-diagonal (3*zp, out_pad)
    w2 = jnp.zeros((3 * zp, out_pad), jnp.float32)
    w2 = w2.at[0:zdim, 0:pts_dim].set(params["wp2"])
    w2 = w2.at[zp:zp + zdim, pts_dim:pts_dim + wid_dim].set(params["ww2"])
    w2 = w2.at[2 * zp:2 * zp + zdim, pts_dim + wid_dim:tot].set(params["wc2"])
    w2 = w2.astype(jnp.bfloat16)
    b2 = jnp.zeros((1, out_pad), jnp.float32)
    b2 = b2.at[:, 0:pts_dim].set(params["bp2"][0])
    b2 = b2.at[:, pts_dim:pts_dim + wid_dim].set(params["bw2"][0])
    b2 = b2.at[:, pts_dim + wid_dim:tot].set(params["bc2"][0])

    return (wenc_exp, benc, w1, b1, w2, b2), zp, out_pad


# ---------------------------------------------------------------------------
# Forward wrapper
# ---------------------------------------------------------------------------
def realae2_forward(x, params, *, im_size, max_width, paths, segments):
    """x: (B, C, H, W) float32 NCHW.  Returns dict of points/widths/colors."""
    B, C, H, W = x.shape
    HW = H * W
    K = C * HW
    zdim = params["wenc"].shape[1]

    pts_dim = 2 * paths * (segments * 3 + 1)
    wid_dim = paths
    col_dim = paths * 4
    tot = pts_dim + wid_dim + col_dim
    half_im = float(im_size // 2)

    # reduction tiling: cap the per-step K block so image + encoder-weight
    # blocks stay small in VMEM even for 224x224x3 inputs / zdim=2048.
    TK = min(_round_up(K, 128), 2048)
    Kp = _round_up(K, TK)
    nk = Kp // TK

    weights, zp, out_pad = _pack_params(params, HW=HW, Kp=Kp, zdim=zdim,
                                        pts_dim=pts_dim, wid_dim=wid_dim,
                                        col_dim=col_dim)
    wenc_exp, benc, w1, b1, w2, b2 = weights

    # bf16 image, flattened to (B, C*H*W) so the GAP rides the encoder matmul.
    x2 = x.reshape(B, K).astype(jnp.bfloat16)
    if Kp != K:
        x2 = jnp.pad(x2, ((0, 0), (0, Kp - K)))

    # batch tile: fill the MXU M dimension; for small B the grid collapses to
    # a single batch step (weights + image loaded once).
    TB = B if B <= 128 else 128
    grid = (pl.cdiv(B, TB), nk)

    in_specs = [
        pl.BlockSpec((TB, TK), lambda b, k: (b, k)),       # image block
        pl.BlockSpec((TK, zp), lambda b, k: (k, 0)),       # encoder weight block
        pl.BlockSpec(benc.shape, lambda b, k: (0, 0)),
        pl.BlockSpec(w1.shape, lambda b, k: (0, 0)),
        pl.BlockSpec(b1.shape, lambda b, k: (0, 0)),
        pl.BlockSpec(w2.shape, lambda b, k: (0, 0)),
        pl.BlockSpec(b2.shape, lambda b, k: (0, 0)),
    ]
    out_specs = pl.BlockSpec((TB, out_pad), lambda b, k: (b, 0))

    kernel = functools.partial(realae2_kernel,
                               half_im=half_im,
                               max_width=float(max_width),
                               pts_dim=pts_dim, wid_dim=wid_dim,
                               col_dim=col_dim)

    slab = pl.pallas_call(
        kernel,
        out_shape=jax.ShapeDtypeStruct((B, out_pad), jnp.float32),
        grid=grid,
        in_specs=in_specs,
        out_specs=out_specs,
        scratch_shapes=[pltpu.VMEM((TB, zp), jnp.float32)],
        compiler_params=pltpu.CompilerParams(
            dimension_semantics=("parallel", "arbitrary")),
    )(x2, wenc_exp, benc, w1, b1, w2, b2)

    # glue slicing/reshapes (matching RealAE2.forward .view(...) calls)
    points = slab[:, :pts_dim].reshape(B, paths, segments * 3 + 1, 2)
    widths = slab[:, pts_dim:pts_dim + wid_dim].reshape(B, paths)
    colors = slab[:, pts_dim + wid_dim:tot].reshape(B, paths, 4)
    return {"points": points, "widths": widths, "colors": colors}


# ---------------------------------------------------------------------------
# Pure-JAX reference (mimics the kernel's bf16 casts) for verification
# ---------------------------------------------------------------------------
def realae2_reference(x, params, *, im_size, max_width, paths, segments):
    B, C, H, W = x.shape
    f32 = jnp.float32
    bf = lambda a: a.astype(jnp.bfloat16).astype(f32)

    pooled = jnp.mean(bf(x).reshape(B, C, H * W), axis=-1)          # (B, C)
    z = pooled @ bf(params["wenc"]) + params["benc"]
    zb = bf(z)

    def head(w1, b1, w2, b2):
        h = jnp.maximum(zb @ bf(w1) + b1, 0.0)
        return bf(h) @ bf(w2) + b2

    half_im = float(im_size // 2)
    p = jnp.tanh(head(params["wp1"], params["bp1"],
                      params["wp2"], params["bp2"])) * half_im + half_im
    w = jax.nn.sigmoid(head(params["ww1"], params["bw1"],
                            params["ww2"], params["bw2"]))
    w = (float(max_width) - 1.0) * w + 1.0
    c = jnp.clip(head(params["wc1"], params["bc1"],
                      params["wc2"], params["bc2"]), 0.0, 1.0)
    return {"points": p.reshape(B, paths, segments * 3 + 1, 2),
            "widths": w.reshape(B, paths),
            "colors": c.reshape(B, paths, 4)}


# ---------------------------------------------------------------------------
# Synthetic init mirroring the module's parameter shapes
# ---------------------------------------------------------------------------
def init_params(key, *, in_ch, zdim, paths, segments):
    pts_dim = 2 * paths * (segments * 3 + 1)
    wid_dim = paths
    col_dim = paths * 4

    def linear(k, fan_in, fan_out):
        scale = 1.0 / math.sqrt(fan_in)
        kw, kb = jax.random.split(k)
        w = jax.random.uniform(kw, (fan_in, fan_out), jnp.float32, -scale, scale)
        b = jax.random.uniform(kb, (1, fan_out), jnp.float32, -scale, scale)
        return w, b

    keys = jax.random.split(key, 8)
    wenc, benc = linear(keys[0], in_ch, zdim)        # encoder fc proxy
    wp1, bp1 = linear(keys[1], zdim, zdim)           # point head
    wp2, bp2 = linear(keys[2], zdim, pts_dim)
    ww1, bw1 = linear(keys[3], zdim, zdim)           # width head
    # Predictor._init_param: width head final layer weight & bias = 0
    ww2 = jnp.zeros((zdim, wid_dim), jnp.float32)
    bw2 = jnp.zeros((1, wid_dim), jnp.float32)
    wc1, bc1 = linear(keys[4], zdim, zdim)           # color head
    wc2, bc2 = linear(keys[5], zdim, col_dim)

    return dict(wenc=wenc, benc=benc,
                wp1=wp1, bp1=bp1, wp2=wp2, bp2=bp2,
                ww1=ww1, bw1=bw1, ww2=ww2, bw2=bw2,
                wc1=wc1, bc1=bc1, wc2=wc2, bc2=bc2)


if __name__ == "__main__":
    # small, forward-consistent shapes
    B, C, H, W = 2, 3, 16, 16
    zdim = 64
    paths = 8
    segments = 3
    im_size = 16
    max_width = 2

    key = jax.random.PRNGKey(0)
    kx, kp = jax.random.split(key)
    x = jax.random.uniform(kx, (B, C, H, W), jnp.float32)
    params = init_params(kp, in_ch=C, zdim=zdim, paths=paths, segments=segments)

    out = realae2_forward(x, params, im_size=im_size, max_width=max_width,
                          paths=paths, segments=segments)
    out = jax.block_until_ready(out)

    assert out["points"].shape == (B, paths, segments * 3 + 1, 2)
    assert out["widths"].shape == (B, paths)
    assert out["colors"].shape == (B, paths, 4)

    ref = realae2_reference(x, params, im_size=im_size, max_width=max_width,
                            paths=paths, segments=segments)
    np.testing.assert_allclose(np.asarray(out["points"]),
                               np.asarray(ref["points"]), atol=1e-2, rtol=1e-2)
    np.testing.assert_allclose(np.asarray(out["widths"]),
                               np.asarray(ref["widths"]), atol=1e-2, rtol=1e-2)
    np.testing.assert_allclose(np.asarray(out["colors"]),
                               np.asarray(ref["colors"]), atol=1e-2, rtol=1e-2)

    print("KERNEL_OK")
</pallas_src>

<mosaic_0001>
module attributes {stable_mosaic.version = 11 : i64} {
  func.func @realae2_kernel(%arg0: i32, %arg1: i32, %arg2: memref<2x768xbf16, #tpu.memory_space<vmem>>, %arg3: memref<768x128xbf16, #tpu.memory_space<vmem>>, %arg4: memref<1x128xf32, #tpu.memory_space<vmem>>, %arg5: memref<128x384xbf16, #tpu.memory_space<vmem>>, %arg6: memref<1x384xf32, #tpu.memory_space<vmem>>, %arg7: memref<384x256xbf16, #tpu.memory_space<vmem>>, %arg8: memref<1x256xf32, #tpu.memory_space<vmem>>, %arg9: memref<2x256xf32, #tpu.memory_space<vmem>>, %arg10: memref<2x128xf32, #tpu.memory_space<vmem>>) attributes {dimension_semantics = [#tpu.dimension_semantics<parallel>, #tpu.dimension_semantics<arbitrary>], iteration_bounds = array<i64: 1, 1>, scalar_prefetch = 0 : i64, scratch_operands = 1 : i64, tpu.core_type = #tpu.core_type<tc>, window_params = [{transform_indices = @transform_0, window_bounds = array<i64: 2, 768>}, {transform_indices = @transform_1, window_bounds = array<i64: 768, 128>}, {pipeline_mode = #tpu.pipeline_mode<synchronous>, transform_indices = @transform_2, window_bounds = array<i64: 1, 128>}, {pipeline_mode = #tpu.pipeline_mode<synchronous>, transform_indices = @transform_3, window_bounds = array<i64: 128, 384>}, {pipeline_mode = #tpu.pipeline_mode<synchronous>, transform_indices = @transform_4, window_bounds = array<i64: 1, 384>}, {pipeline_mode = #tpu.pipeline_mode<synchronous>, transform_indices = @transform_5, window_bounds = array<i64: 384, 256>}, {pipeline_mode = #tpu.pipeline_mode<synchronous>, transform_indices = @transform_6, window_bounds = array<i64: 1, 256>}, {transform_indices = @transform_7, window_bounds = array<i64: 2, 256>}]} {
    %c0_i32 = arith.constant 0 : i32
    %0 = arith.cmpi eq, %arg1, %c0_i32 : i32
    %1 = arith.extui %0 : i1 to i32
    %c0_i32_0 = arith.constant 0 : i32
    %2 = arith.cmpi ne, %1, %c0_i32_0 : i32
    scf.if %2 {
      %cst_10 = arith.constant 0.000000e+00 : f32
      %12 = vector.broadcast %cst_10 : f32 to vector<2x128xf32>
      %c0_11 = arith.constant 0 : index
      %c0_12 = arith.constant 0 : index
      %13 = vector.load %arg10[%c0_11, %c0_12] : memref<2x128xf32, #tpu.memory_space<vmem>>, vector<2x128xf32>
      tpu.vector_store %arg10[%c0_11, %c0_12], %12 {strides = array<i32>} : memref<2x128xf32, #tpu.memory_space<vmem>>, vector<2x128xf32>,
    } else {
    }
    %c0 = arith.constant 0 : index
    %c0_1 = arith.constant 0 : index
    %3 = vector.load %arg10[%c0, %c0_1] : memref<2x128xf32, #tpu.memory_space<vmem>>, vector<2x128xf32>
    %c0_2 = arith.constant 0 : index
    %c0_3 = arith.constant 0 : index
    %4 = vector.load %arg2[%c0_2, %c0_3] : memref<2x768xbf16, #tpu.memory_space<vmem>>, vector<2x768xbf16>
    %c0_4 = arith.constant 0 : index
    %c0_5 = arith.constant 0 : index
    %5 = vector.load %arg3[%c0_4, %c0_5] : memref<768x128xbf16, #tpu.memory_space<vmem>>, vector<768x128xbf16>
    %cst = arith.constant dense<0.000000e+00> : vector<2x128xf32>
    %6 = tpu.matmul %4, %5, %cst {dimension_numbers = #tpu.dot_dimension_numbers<[1], [0], [0], [1], [0, 0, 1, 1], [], []>} : vector<2x768xbf16>, vector<768x128xbf16>, vector<2x128xf32> -> vector<2x128xf32>
    %7 = arith.addf %3, %6 : vector<2x128xf32>
    %c0_6 = arith.constant 0 : index
    %c0_7 = arith.constant 0 : index
    %8 = vector.load %arg10[%c0_6, %c0_7] : memref<2x128xf32, #tpu.memory_space<vmem>>, vector<2x128xf32>
    tpu.vector_store %arg10[%c0_6, %c0_7], %7 {strides = array<i32>} : memref<2x128xf32, #tpu.memory_space<vmem>>, vector<2x128xf32>,
    %c0_i32_8 = arith.constant 0 : i32
    %9 = arith.cmpi eq, %arg1, %c0_i32_8 : i32
    %10 = arith.extui %9 : i1 to i32
    %c0_i32_9 = arith.constant 0 : i32
    %11 = arith.cmpi ne, %10, %c0_i32_9 : i32
    scf.if %11 {
      %c0_10 = arith.constant 0 : index
      %c0_11 = arith.constant 0 : index
      %12 = vector.load %arg10[%c0_10, %c0_11] : memref<2x128xf32, #tpu.memory_space<vmem>>, vector<2x128xf32>
      %c0_12 = arith.constant 0 : index
      %c0_13 = arith.constant 0 : index
      %13 = vector.load %arg4[%c0_12, %c0_13] : memref<1x128xf32, #tpu.memory_space<vmem>>, vector<1x128xf32>
      %14 = vector.broadcast %13 : vector<1x128xf32> to vector<2x128xf32>
      %15 = arith.addf %12, %14 : vector<2x128xf32>
      %16 = arith.truncf %15 : vector<2x128xf32> to vector<2x128xbf16>
      %c0_14 = arith.constant 0 : index
      %c0_15 = arith.constant 0 : index
      %17 = vector.load %arg5[%c0_14, %c0_15] : memref<128x384xbf16, #tpu.memory_space<vmem>>, vector<128x384xbf16>
      %cst_16 = arith.constant dense<0.000000e+00> : vector<2x384xf32>
      %18 = tpu.matmul %16, %17, %cst_16 {dimension_numbers = #tpu.dot_dimension_numbers<[1], [0], [0], [1], [0, 0, 1, 1], [], []>} : vector<2x128xbf16>, vector<128x384xbf16>, vector<2x384xf32> -> vector<2x384xf32>
      %c0_17 = arith.constant 0 : index
      %c0_18 = arith.constant 0 : index
      %19 = vector.load %arg6[%c0_17, %c0_18] : memref<1x384xf32, #tpu.memory_space<vmem>>, vector<1x384xf32>
      %20 = vector.broadcast %19 : vector<1x384xf32> to vector<2x384xf32>
      %21 = arith.addf %18, %20 : vector<2x384xf32>
      %cst_19 = arith.constant 0.000000e+00 : f32
      %22 = vector.broadcast %cst_19 : f32 to vector<2x384xf32>
      %23 = arith.maximumf %21, %22 : vector<2x384xf32>
      %24 = arith.truncf %23 : vector<2x384xf32> to vector<2x384xbf16>
      %c0_20 = arith.constant 0 : index
      %c0_21 = arith.constant 0 : index
      %25 = vector.load %arg7[%c0_20, %c0_21] : memref<384x256xbf16, #tpu.memory_space<vmem>>, vector<384x256xbf16>
      %cst_22 = arith.constant dense<0.000000e+00> : vector<2x256xf32>
      %26 = tpu.matmul %24, %25, %cst_22 {dimension_numbers = #tpu.dot_dimension_numbers<[1], [0], [0], [1], [0, 0, 1, 1], [], []>} : vector<2x384xbf16>, vector<384x256xbf16>, vector<2x256xf32> -> vector<2x256xf32>
      %c0_23 = arith.constant 0 : index
      %c0_24 = arith.constant 0 : index
      %27 = vector.load %arg8[%c0_23, %c0_24] : memref<1x256xf32, #tpu.memory_space<vmem>>, vector<1x256xf32>
      %28 = vector.broadcast %27 : vector<1x256xf32> to vector<2x256xf32>
      %29 = arith.addf %26, %28 : vector<2x256xf32>
      %30 = tpu.iota {dimensions = array<i32: 1>} : vector<2x256xi32>
      %31 = math.tanh %29 : vector<2x256xf32>
      %cst_25 = arith.constant 8.000000e+00 : f32
      %32 = vector.broadcast %cst_25 : f32 to vector<2x256xf32>
      %33 = arith.mulf %31, %32 : vector<2x256xf32>
      %cst_26 = arith.constant 8.000000e+00 : f32
      %34 = vector.broadcast %cst_26 : f32 to vector<2x256xf32>
      %35 = arith.addf %33, %34 : vector<2x256xf32>
      %36 = arith.negf %29 : vector<2x256xf32>
      %37 = math.exp %36 : vector<2x256xf32>
      %cst_27 = arith.constant 1.000000e+00 : f32
      %38 = vector.broadcast %cst_27 : f32 to vector<2x256xf32>
      %39 = arith.addf %38, %37 : vector<2x256xf32>
      %40 = arith.divf %38, %39 : vector<2x256xf32>
      %cst_28 = arith.constant 1.000000e+00 : f32
      %41 = vector.broadcast %cst_28 : f32 to vector<2x256xf32>
      %42 = arith.mulf %41, %40 : vector<2x256xf32>
      %cst_29 = arith.constant 1.000000e+00 : f32
      %43 = vector.broadcast %cst_29 : f32 to vector<2x256xf32>
      %44 = arith.addf %42, %43 : vector<2x256xf32>
      %cst_30 = arith.constant 0.000000e+00 : f32
      %cst_31 = arith.constant 1.000000e+00 : f32
      %45 = vector.broadcast %cst_30 : f32 to vector<2x256xf32>
      %46 = arith.maximumf %45, %29 : vector<2x256xf32>
      %47 = vector.broadcast %cst_31 : f32 to vector<2x256xf32>
      %48 = arith.minimumf %47, %46 : vector<2x256xf32>
      %c160_i32 = arith.constant 160 : i32
      %49 = vector.broadcast %c160_i32 : i32 to vector<2x256xi32>
      %50 = arith.cmpi slt, %30, %49 : vector<2x256xi32>
      %c168_i32 = arith.constant 168 : i32
      %51 = vector.broadcast %c168_i32 : i32 to vector<2x256xi32>
      %52 = arith.cmpi slt, %30, %51 : vector<2x256xi32>
      %c200_i32 = arith.constant 200 : i32
      %53 = vector.broadcast %c200_i32 : i32 to vector<2x256xi32>
      %54 = arith.cmpi slt, %30, %53 : vector<2x256xi32>
      %cst_32 = arith.constant 0.000000e+00 : f32
      %55 = vector.broadcast %cst_32 : f32 to vector<2x256xf32>
      %56 = arith.select %54, %48, %55 : vector<2x256xi1>, vector<2x256xf32>
      %57 = arith.select %52, %44, %56 : vector<2x256xi1>, vector<2x256xf32>
      %58 = arith.select %50, %35, %57 : vector<2x256xi1>, vector<2x256xf32>
      %c0_33 = arith.constant 0 : index
      %c0_34 = arith.constant 0 : index
      %59 = vector.load %arg9[%c0_33, %c0_34] : memref<2x256xf32, #tpu.memory_space<vmem>>, vector<2x256xf32>
      tpu.vector_store %arg9[%c0_33, %c0_34], %58 {strides = array<i32>} : memref<2x256xf32, #tpu.memory_space<vmem>>, vector<2x256xf32>,
    } else {
    }
    return
  }
  func.func @transform_0(%arg0: i32, %arg1: i32) -> (i32, i32) {
    %c0_i32 = arith.constant 0 : i32
    return %arg0, %arg1 : i32, i32
  }
  func.func @transform_1(%arg0: i32, %arg1: i32) -> (i32, i32) {
    %c0_i32 = arith.constant 0 : i32
    %c0_i32_0 = arith.constant 0 : i32
    return %arg1, %c0_i32 : i32, i32
  }
  func.func @transform_2(%arg0: i32, %arg1: i32) -> (i32, i32) {
    %c0_i32 = arith.constant 0 : i32
    %c0_i32_0 = arith.constant 0 : i32
    %c0_i32_1 = arith.constant 0 : i32
    return %c0_i32, %c0_i32_0 : i32, i32
  }
  func.func @transform_3(%arg0: i32, %arg1: i32) -> (i32, i32) {
    %c0_i32 = arith.constant 0 : i32
    %c0_i32_0 = arith.constant 0 : i32
    %c0_i32_1 = arith.constant 0 : i32
    return %c0_i32, %c0_i32_0 : i32, i32
  }
  func.func @transform_4(%arg0: i32, %arg1: i32) -> (i32, i32) {
    %c0_i32 = arith.constant 0 : i32
    %c0_i32_0 = arith.constant 0 : i32
    %c0_i32_1 = arith.constant 0 : i32
    return %c0_i32, %c0_i32_0 : i32, i32
  }
  func.func @transform_5(%arg0: i32, %arg1: i32) -> (i32, i32) {
    %c0_i32 = arith.constant 0 : i32
    %c0_i32_0 = arith.constant 0 : i32
    %c0_i32_1 = arith.constant 0 : i32
    return %c0_i32, %c0_i32_0 : i32, i32
  }
  func.func @transform_6(%arg0: i32, %arg1: i32) -> (i32, i32) {
    %c0_i32 = arith.constant 0 : i32
    %c0_i32_0 = arith.constant 0 : i32
    %c0_i32_1 = arith.constant 0 : i32
    return %c0_i32, %c0_i32_0 : i32, i32
  }
  func.func @transform_7(%arg0: i32, %arg1: i32) -> (i32, i32) {
    %c0_i32 = arith.constant 0 : i32
    %c0_i32_0 = arith.constant 0 : i32
    return %arg0, %c0_i32 : i32, i32
  }
}

</mosaic_0001>

<bundles_post_ra>
// kernel: tpu_custom_call.1
= control target key start
LH: loop header
LB: loop body
LE: loop exit
PB: predicated region body
PF: predicated region fallthrough
CT: control target
= control target key end

     0   :  { %12 = vsyncpa [#allocation4], 0  ;;  %s2040_s0 = inlined_call_operand.hbm [shape: bf16[2,768], index: 0, kind: input, shape index: {}]   ;;  %s2041_s1 = inlined_call_operand.hbm [shape: bf16[768,128], index: 1, kind: input, shape index: {}]   ;;  %s2042_s2 = inlined_call_operand.vmem [shape: f32[1,128], index: 2, kind: input, shape index: {}]   ;;  %s2043_s3 = inlined_call_operand.hbm [shape: bf16[128,384], index: 3, kind: input, shape index: {}]   ;;  %s2044_s4 = inlined_call_operand.vmem [shape: f32[1,384], index: 4, kind: input, shape index: {}]   ;;  %s2045_s5 = inlined_call_operand.hbm [shape: bf16[384,256], index: 5, kind: input, shape index: {}]   ;;  %s2046_s6 = inlined_call_operand.vmem [shape: f32[1,256], index: 6, kind: input, shape index: {}]   ;;  %s2047_s7 = inlined_call_operand.hbm [shape: f32[2,256], index: 7, kind: output, shape index: {}]  }
   0x1   :  { %13 = vsyncpa [#allocation7], 0 }
   0x2   :  { %14 = vsyncpa [#allocation10], 0 }
   0x3   :  { %15 = vsyncpa [#allocation5], 0  ;;  %s1894_s24 = smov [#allocation6]   ;;  %s1776_s28 = scalar_lea.hbm %s2041_s1, 6144 }
   0x4   :  { %s31_s25 = sshll.u32 %s1894_s24, 4  ;;  %p1777_p0 = scmp.ne.s32.totalorder %s2041_s1, %s1776_s28  ;;  %s32_s25 = int_to_ptr.vmem [resolvable:$true] %s31_s25 }
   0x5   :  { %p1780_p1 = scmp.lt.u32.totalorder %s1776_s28, %s2041_s1 }
   0x7   :  { %p1782_p2 = pnand %p1780_p1, %p1777_p0 }
   0x9   :  { %1785 = shalt.err (!%p1782_p2)
}
   0xa   :  { %s1786_s10 = scalar_lea.vmem %s32_s25, 6144  ;;  %p1791_p4 = scmp.lt.s32.totalorder %s32_s25, %s32_s25 }
   0xb   :  { %p1787_p3 = scmp.ne.s32.totalorder %s32_s25, %s1786_s10  ;;  %p1792_p5 = scmp.lt.s32.totalorder %s1786_s10, %s1786_s10 }
   0xd   :  { %p1793_p6 = por %p1792_p5, %p1791_p4 }
   0xf   :  { %p1794_p7 = pnand %p1793_p6, %p1787_p3 }
  0x11   :  { %1797 = shalt.err (!%p1794_p7)
}
  0x12   :  { %s1895_s11 = smov 64   ;;  %s1896_s12 = smov 4  }
  0x13   :  { %37 = dma.hbm_to_vmem [thread:$0]  %s2041_s1, 6144, %s32_s25, [#allocation7], %s1895_s11, %s1895_s11, %s1896_s12  }
  0x14   :  { %s1897_s15 = smov [#allocation3]   ;;  %s1898_s17 = smov [#allocation8]  }
  0x15   :  { %s22_s16 = sshll.u32 %s1897_s15, 4  ;;  %s45_s18 = sshll.u32 %s1898_s17, 4  ;;  %s23_s16 = int_to_ptr.vmem [resolvable:$true] %s22_s16  ;;  %s46_s18 = int_to_ptr.vmem [resolvable:$true] %s45_s18 }
  0x16   :  { %s1798_s21 = scalar_lea.hbm %s2040_s0, 96 }
  0x17   :  { %p1799_p8 = scmp.ne.s32.totalorder %s2040_s0, %s1798_s21  ;;  %p1802_p9 = scmp.lt.u32.totalorder %s1798_s21, %s2040_s0 }
  0x19   :  { %p1804_p10 = pnand %p1802_p9, %p1799_p8 }
  0x1b   :  { %1807 = shalt.err (!%p1804_p10)
}
  0x1c   :  { %s1808_s1 = scalar_lea.vmem %s23_s16, 96  ;;  %p1813_p12 = scmp.lt.s32.totalorder %s23_s16, %s23_s16 }
  0x1d   :  { %p1809_p11 = scmp.ne.s32.totalorder %s23_s16, %s1808_s1  ;;  %p1814_p13 = scmp.lt.s32.totalorder %s1808_s1, %s1808_s1 }
  0x1f   :  { %p1815_p0 = por %p1814_p13, %p1813_p12 }
  0x21   :  { %p1816_p1 = pnand %p1815_p0, %p1809_p11 }
  0x23   :  { %1819 = shalt.err (!%p1816_p1)
}
  0x24   :  { %25 = dma.hbm_to_vmem [thread:$0]  %s2040_s0, 96, %s23_s16, [#allocation4]  }
  0x25   :  { %s1820_s30 = scalar_lea.hbm %s2043_s3, 3072 }
  0x26   :  { %p1821_p2 = scmp.ne.s32.totalorder %s2043_s3, %s1820_s30  ;;  %p1824_p3 = scmp.lt.u32.totalorder %s1820_s30, %s2043_s3 }
  0x28   :  { %p1826_p4 = pnand %p1824_p3, %p1821_p2 }
  0x2a   :  { %1829 = shalt.err (!%p1826_p4)
}
  0x2b   :  { %s1830_s12 = scalar_lea.vmem %s46_s18, 3072  ;;  %p1835_p6 = scmp.lt.s32.totalorder %s46_s18, %s46_s18 }
  0x2c   :  { %p1831_p5 = scmp.ne.s32.totalorder %s46_s18, %s1830_s12  ;;  %p1836_p7 = scmp.lt.s32.totalorder %s1830_s12, %s1830_s12 }
  0x2e   :  { %p1837_p8 = por %p1836_p7, %p1835_p6 }
  0x30   :  { %p1838_p9 = pnand %p1837_p8, %p1831_p5 }
  0x32   :  { %1841 = shalt.err (!%p1838_p9)
}
  0x33   :  { %s1899_s0 = smov 192   ;;  %s1900_s13 = smov 12  }
  0x34   :  { %51 = dma.hbm_to_vmem [thread:$0]  %s2043_s3, 3072, %s46_s18, [#allocation7], %s1899_s0, %s1899_s0, %s1900_s13  }
  0x35   :  { %s1901_s16 = smov [#allocation9]   ;;  %s1842_s21 = scalar_lea.hbm %s2045_s5, 6144 }
  0x36   :  { %s59_s17 = sshll.u32 %s1901_s16, 4  ;;  %p1843_p10 = scmp.ne.s32.totalorder %s2045_s5, %s1842_s21  ;;  %s60_s17 = int_to_ptr.vmem [resolvable:$true] %s59_s17 }
  0x37   :  { %p1846_p11 = scmp.lt.u32.totalorder %s1842_s21, %s2045_s5 }
  0x39   :  { %p1848_p12 = pnand %p1846_p11, %p1843_p10 }
  0x3b   :  { %1851 = shalt.err (!%p1848_p12)
}
  0x3c   :  { %s1852_s1 = scalar_lea.vmem %s60_s17, 6144  ;;  %p1857_p0 = scmp.lt.s32.totalorder %s60_s17, %s60_s17 }
  0x3d   :  { %p1853_p13 = scmp.ne.s32.totalorder %s60_s17, %s1852_s1  ;;  %p1858_p1 = scmp.lt.s32.totalorder %s1852_s1, %s1852_s1 }
  0x3f   :  { %p1859_p2 = por %p1858_p1, %p1857_p0 }
  0x41   :  { %p1860_p3 = pnand %p1859_p2, %p1853_p13 }
  0x43   :  { %1863 = shalt.err (!%p1860_p3)
}
  0x44   :  { %s1902_s3 = smov 128   ;;  %s1903_s18 = smov 8  }
  0x45   :  { %65 = dma.hbm_to_vmem [thread:$0]  %s2045_s5, 6144, %s60_s17, [#allocation10], %s1902_s3, %s1902_s3, %s1903_s18  }
  0x46   :  { %1886 = dma.done.wait [#allocation4], 96  }
  0x47   :  { %1887 = vsyncadd [#allocation4], 4294967200 }
  0x48   :  { %1888 = dma.done.wait [#allocation7], 9216  }
  0x49   :  { %1889 = vsyncadd [#allocation7], 4294958080 }
  0x4a   :  { %1890 = dma.done.wait [#allocation10], 6144  }
  0x4b   :  { %1891 = vsyncadd [#allocation10], 4294961152  ;;  %v1615_v0 = vld [vmem:[#allocation6 + $0x40] sm:$0xff]   ;;  %v1617_v2 = vld [vmem:[#allocation6 + $0x48] sm:$0xff]   ;;  %v1904_v5 = vmov 1966171168   ;;  %v189_v7 = vlaneseq }
  0x4c   :  { %v1616_v1 = vld [vmem:[#allocation6] sm:$0xff]   ;;  %1499 = vmatprep.subr.bf16.mxu0 %v1615_v0  ;;  %v1618_v3 = vld [vmem:[#allocation6 + $0x8] sm:$0xff]   ;;  %v1619_v4 = vld [vmem:[#allocation6 + $0x50] sm:$0xff]   ;;  %v187_v6 = vunpack.c.l.s4 %v1904_v5  ;;  %vm1907_vm0 = vmmov 0  }
  0x4d   :  { %1500 = vmatpush3.bf16.msra.mxu0 %v1616_v1  ;;  %v1620_v8 = vld [vmem:[#allocation6 + $0x10] sm:$0xff]   ;;  %v1621_v9 = vld [vmem:[#allocation6 + $0x58] sm:$0xff]   ;;  %v1998_v11 = vshrl.u32 %v189_v7, 7  ;;  %v1623_v13 = vld [vmem:[#allocation6 + $0x60] sm:$0xff]  }
  0x4e   :  { %1501 = vmatprep.subr.bf16.mxu0 %v1617_v2  ;;  %v188_v10 = vunpack.c.0.s8 %v187_v6  ;;  %v1622_v12 = vld [vmem:[#allocation6 + $0x18] sm:$0xff]   ;;  %v1624_v15 = vld [vmem:[#allocation6 + $0x20] sm:$0xff]   ;;  %v1625_v16 = vld [vmem:[#allocation6 + $0x68] sm:$0xff]  }
  0x4f   :  { %v87_v17 = vld [vmem:[#allocation3] sm:$0x3f]  ;;  %v1626_v19 = vld [vmem:[#allocation6 + $0x28] sm:$0xff]   ;;  %v1627_v21 = vld [vmem:[#allocation6 + $0x70] sm:$0xff]  }
  0x50   :  { %v2001_v14 = vsub.s32 %v188_v10, %v1998_v11  ;;  %v1628_v23 = vld [vmem:[#allocation6 + $0x30] sm:$0xff]   ;;  %v1629_v24 = vld [vmem:[#allocation6 + $0x78] sm:$0xff]   ;;  %v1632_v26 = vld [vmem:[#allocation6 + $0xc0] sm:$0xff]   ;;  %v185_v41 = vcombine.high %v87_v17, %v87_v17 }
  0x51   :  { %1502 = vmatpush3.bf16.msra.mxu0 %v1618_v3  ;;  %v1630_v25 = vld [vmem:[#allocation6 + $0x38] sm:$0xff]   ;;  %v1633_v29 = vld [vmem:[#allocation6 + $0x80] sm:$0xff]   ;;  %v1634_v30 = vld [vmem:[#allocation6 + $0xc8] sm:$0xff]  }
  0x52   :  { %1503 = vmatprep.subr.bf16.mxu0 %v1619_v4  ;;  %v192_v18 = vrot.slane %v87_v17, %v2001_v14  ;;  %v1635_v31 = vld [vmem:[#allocation6 + $0x88] sm:$0xff]   ;;  %v1636_v32 = vld [vmem:[#allocation6 + $0xd0] sm:$0xff]   ;;  %v1638_v34 = vld [vmem:[#allocation6 + $0xd8] sm:$0xff]   ;;  %v199_v44 = vrot.slane %v185_v41, %v2001_v14  ;;  %v1905_v4 = vmov 0.0  }
  0x53   :  { %v1637_v33 = vld [vmem:[#allocation6 + $0x90] sm:$0xff]   ;;  %v1639_v35 = vld [vmem:[#allocation6 + $0x98] sm:$0xff]   ;;  %v1640_v36 = vld [vmem:[#allocation6 + $0xe0] sm:$0xff]   ;;  %85 = vst [vmem:[#allocation2] sm:$0x3] %v1905_v4 }
  0x54   :  { %v200_v20 = vcombine.high %v192_v18, %v192_v18  ;;  %v208_v27 = vrot.slane %v192_v18, %v2001_v14  ;;  %v1641_v37 = vld [vmem:[#allocation6 + $0xa0] sm:$0xff]   ;;  %v1642_v38 = vld [vmem:[#allocation6 + $0xe8] sm:$0xff]   ;;  %v1644_v40 = vld [vmem:[#allocation6 + $0xf0] sm:$0xff]   ;;  %v201_v47 = vcombine.high %v199_v44, %v199_v44  ;;  %v215_v1 = vrot.slane %v199_v44, %v2001_v14 }
  0x55   :  { %1504 = vmatpush3.bf16.msra.mxu0 %v1620_v8  ;;  %v1643_v39 = vld [vmem:[#allocation6 + $0xa8] sm:$0xff]   ;;  %v1645_v42 = vld [vmem:[#allocation6 + $0xb0] sm:$0xff]   ;;  %v1646_v43 = vld [vmem:[#allocation6 + $0xf8] sm:$0xff]  }
  0x56   :  { %1505 = vmatprep.subr.bf16.mxu0 %v1621_v9  ;;  %v222_v22 = vrot.slane %v200_v20, %v2001_v14  ;;  %v1647_v45 = vld [vmem:[#allocation6 + $0xb8] sm:$0xff]   ;;  %v1648_v46 = vld [vmem:[#allocation6 + $0x140] sm:$0xff]   ;;  %v230_v49 = vcombine.high %v208_v27, %v208_v27  ;;  %v1650_v50 = vld [vmem:[#allocation6 + $0x148] sm:$0xff]   ;;  %v229_v51 = vrot.slane %v201_v47, %v2001_v14 }
  0x57   :  { %v1649_v48 = vld [vmem:[#allocation6 + $0x100] sm:$0xff]   ;;  %v1651_v52 = vld [vmem:[#allocation6 + $0x108] sm:$0xff]   ;;  %v1652_v53 = vld [vmem:[#allocation6 + $0x150] sm:$0xff]  }
  0x58   :  { %558 = vmatprep.mubr.bf16.mxu0 %v222_v22  ;;  %v231_v28 = vcombine.high %v222_v22, %v222_v22  ;;  %v1653_v54 = vld [vmem:[#allocation6 + $0x110] sm:$0xff]   ;;  %v1654_v55 = vld [vmem:[#allocation6 + $0x158] sm:$0xff]   ;;  %v1656_v57 = vld [vmem:[#allocation6 + $0x160] sm:$0xff]  }
  0x59   :  { %1506 = vmatpush3.bf16.msra.mxu0 %v1622_v12  ;;  %v1655_v56 = vld [vmem:[#allocation6 + $0x118] sm:$0xff]   ;;  %v1657_v58 = vld [vmem:[#allocation6 + $0x120] sm:$0xff]   ;;  %v1658_v59 = vld [vmem:[#allocation6 + $0x168] sm:$0xff]  }
  0x5a   :  { %1507 = vmatprep.subr.bf16.mxu0 %v1623_v13  ;;  %v1659_v60 = vld [vmem:[#allocation6 + $0x128] sm:$0xff]   ;;  %v1660_v61 = vld [vmem:[#allocation6 + $0x170] sm:$0xff]   ;;  %v1662_v63 = vld [vmem:[#allocation6 + $0x178] sm:$0xff]  }
  0x5b   :  { %v1661_v62 = vld [vmem:[#allocation6 + $0x130] sm:$0xff]   ;;  %v1663_v0 = vld [vmem:[#allocation6 + $0x138] sm:$0xff]   ;;  %v1666_v3 = vld [vmem:[#allocation8] ss:$12 sps:$4 sm:$0xff]  }
  0x5c   :  { %v1664_v2 = vld [vmem:[#allocation8 + $0x4] ss:$12 sps:$4 sm:$0xff]   ;;  %v1667_v5 = vld [vmem:[#allocation8 + $0x8] ss:$12 sps:$4 sm:$0xff]   ;;  %v1671_v9 = vld [vmem:[#allocation8 + $0x20] ss:$12 sps:$4 sm:$0xff]  }
  0x5d   :  { %1508 = vmatpush3.bf16.msra.mxu0 %v1624_v15  ;;  %v1668_v6 = vld [vmem:[#allocation8 + $0x1c] ss:$12 sps:$4 sm:$0xff]   ;;  %838 = vmatprep.subr.bf16.mxu1 %v1664_v2  ;;  %v1670_v8 = vld [vmem:[#allocation8 + $0x18] ss:$12 sps:$4 sm:$0xff]   ;;  %v1672_v10 = vld [vmem:[#allocation8 + $0x34] ss:$12 sps:$4 sm:$0xff]  }
  0x5e   :  { %1509 = vmatprep.subr.bf16.mxu0 %v1625_v16  ;;  %839 = vmatpush1.bf16.msra.mxu1 %v1666_v3  ;;  %v1674_v12 = vld [vmem:[#allocation8 + $0x30] ss:$12 sps:$4 sm:$0xff]   ;;  %v1675_v13 = vld [vmem:[#allocation8 + $0x38] ss:$12 sps:$4 sm:$0xff]   ;;  %v1678_v15 = vld [vmem:[#allocation8 + $0x48] ss:$12 sps:$4 sm:$0xff]  }
  0x5f   :  { %840 = vmatprep.subr.bf16.mxu1 %v1668_v6  ;;  %v1676_v14 = vld [vmem:[#allocation8 + $0x4c] ss:$12 sps:$4 sm:$0xff]   ;;  %v1679_v16 = vld [vmem:[#allocation8 + $0x50] ss:$12 sps:$4 sm:$0xff]   ;;  %v1714_v2 = vld [vmem:[#allocation9 + $0x60] ss:$8 sps:$4 sm:$0xff]  }
  0x60   :  { %v1680_v17 = vld [vmem:[#allocation8 + $0x64] ss:$12 sps:$4 sm:$0xff]   ;;  %v1682_v18 = vld [vmem:[#allocation8 + $0x60] ss:$12 sps:$4 sm:$0xff]   ;;  %v1684_v20 = vld [vmem:[#allocation8 + $0x7c] ss:$12 sps:$4 sm:$0xff]  }
  0x61   :  { %1510 = vmatpush3.bf16.msra.mxu0 %v1626_v19  ;;  %v1683_v19 = vld [vmem:[#allocation8 + $0x68] ss:$12 sps:$4 sm:$0xff]   ;;  %v1687_v22 = vld [vmem:[#allocation8 + $0x80] ss:$12 sps:$4 sm:$0xff]  }
  0x62   :  { %1511 = vmatprep.subr.bf16.mxu0 %v1627_v21  ;;  %841 = vmatpush1.bf16.msra.mxu1 %v1670_v8  ;;  %v1686_v21 = vld [vmem:[#allocation8 + $0x78] ss:$12 sps:$4 sm:$0xff]   ;;  %v1719_v3 = vld [vmem:[#allocation9 + $0x74] ss:$8 sps:$4 sm:$0xff]   ;;  %v1720_v6 = vld [vmem:[#allocation9 + $0x80] ss:$8 sps:$4 sm:$0xff]  }
  0x63   :  { %842 = vmatprep.subr.bf16.mxu1 %v1672_v10  ;;  %v1725_v8 = vld [vmem:[#allocation9 + $0x94] ss:$8 sps:$4 sm:$0xff]   ;;  %v1728_v10 = vld [vmem:[#allocation9 + $0xa4] ss:$8 sps:$4 sm:$0xff]  }
  0x65   :  { %1512 = vmatpush3.bf16.msra.mxu0 %v1628_v23  ;;  %v1688_v23 = vld [vmem:[#allocation8 + $0x94] ss:$12 sps:$4 sm:$0xff]  }
  0x66   :  { %1513 = vmatprep.subr.bf16.mxu0 %v1629_v24  ;;  %843 = vmatpush1.bf16.msra.mxu1 %v1674_v12  ;;  %v1690_v24 = vld [vmem:[#allocation8 + $0x90] ss:$12 sps:$4 sm:$0xff]   ;;  %v1726_v12 = vld [vmem:[#allocation9 + $0xa0] ss:$8 sps:$4 sm:$0xff]  }
  0x67   :  { %844 = vmatprep.subr.bf16.mxu1 %v1676_v14  ;;  %v1729_v14 = vld [vmem:[#allocation9 + $0xb0] ss:$8 sps:$4 sm:$0xff]  }
  0x69   :  { %1514 = vmatpush3.bf16.msra.mxu0 %v1630_v25  ;;  %v1691_v25 = vld [vmem:[#allocation8 + $0x98] ss:$12 sps:$4 sm:$0xff]  }
  0x6a   :  { %1521 = vmatprep.subr.bf16.mxu0 %v1632_v26  ;;  %845 = vmatpush1.bf16.msra.mxu1 %v1678_v15  ;;  %v1692_v26 = vld [vmem:[#allocation8 + $0xac] ss:$12 sps:$4 sm:$0xff]  }
  0x6b   :  { %846 = vmatprep.subr.bf16.mxu1 %v1680_v17  ;;  %v1734_v15 = vld [vmem:[#allocation9 + $0xc4] ss:$8 sps:$4 sm:$0xff]   ;;  %v1737_v17 = vld [vmem:[#allocation9 + $0xd4] ss:$8 sps:$4 sm:$0xff]  }
  0x6c   :  { %559 = vmatmul.mubr.bf16.vlgmr.msra.gmra.mrb[0].mxu0 %v208_v27  ;;  %v1906_v27 = vmov 0  }
  0x6d   :  { %1522 = vmatpush3.bf16.msra.mxu0 %v1633_v29  ;;  %598 = vmatprep.mubr.bf16.mxu0 %v231_v28  ;;  %v1694_v28 = vld [vmem:[#allocation8 + $0xa8] ss:$12 sps:$4 sm:$0xff]   ;;  %v1695_v29 = vld [vmem:[#allocation8 + $0xb0] ss:$12 sps:$4 sm:$0xff]  }
  0x6e   :  { %1523 = vmatprep.subr.bf16.mxu0 %v1634_v30  ;;  %847 = vmatpush1.bf16.msra.mxu1 %v1682_v18  ;;  %v1698_v30 = vld [vmem:[#allocation9 + $0x4] ss:$8 sps:$4 sm:$0xff]   ;;  %v1735_v18 = vld [vmem:[#allocation9 + $0xd0] ss:$8 sps:$4 sm:$0xff]  }
  0x6f   :  { %848 = vmatprep.subr.bf16.mxu1 %v1684_v20  ;;  %870 = vmatprep.mubr.bf16.mxu1 %v1906_v27  ;;  %v1738_v20 = vld [vmem:[#allocation9 + $0xe0] ss:$8 sps:$4 sm:$0xff]  }
  0x71   :  { %1524 = vmatpush3.bf16.msra.mxu0 %v1635_v31 }
  0x72   :  { %1525 = vmatprep.subr.bf16.mxu0 %v1636_v32  ;;  %849 = vmatpush1.bf16.msra.mxu1 %v1686_v21  ;;  %v1743_v21 = vld [vmem:[#allocation9 + $0xf4] ss:$8 sps:$4 sm:$0xff]  }
  0x73   :  { %850 = vmatprep.subr.bf16.mxu1 %v1688_v23  ;;  %v1746_v23 = vld [vmem:[#allocation9 + $0x104] ss:$8 sps:$4 sm:$0xff]  }
  0x75   :  { %1526 = vmatpush3.bf16.msra.mxu0 %v1637_v33 }
  0x76   :  { %1527 = vmatprep.subr.bf16.mxu0 %v1638_v34  ;;  %851 = vmatpush1.bf16.msra.mxu1 %v1690_v24  ;;  %v697_v24 = vsub.s32 0, %v1998_v11 }
  0x77   :  { %852 = vmatprep.subr.bf16.mxu1 %v1692_v26  ;;  %v701_v26 = vsub.s32 1, %v1998_v11 }
  0x79   :  { %1528 = vmatpush3.bf16.msra.mxu0 %v1639_v35 }
  0x7a   :  { %1529 = vmatprep.subr.bf16.mxu0 %v1640_v36  ;;  %853 = vmatpush1.bf16.msra.mxu1 %v1694_v28 }
  0x7b   :  { %1225 = vmatprep.subr.bf16.mxu1 %v1698_v30 }
  0x7d   :  { %1530 = vmatpush3.bf16.msra.mxu0 %v1641_v37 }
  0x7e   :  { %1531 = vmatprep.subr.bf16.mxu0 %v1642_v38 }
  0x81   :  { %1532 = vmatpush3.bf16.msra.mxu0 %v1643_v39 }
  0x82   :  { %1533 = vmatprep.subr.bf16.mxu0 %v1644_v40 }
  0x85   :  { %1534 = vmatpush3.bf16.msra.mxu0 %v1645_v42 }
  0x86   :  { %1535 = vmatprep.subr.bf16.mxu0 %v1646_v43 }
  0x89   :  { %1536 = vmatpush3.bf16.msra.mxu0 %v1647_v45 }
  0x8a   :  { %1543 = vmatprep.subr.bf16.mxu0 %v1648_v46  ;;  %v86_v46 = vld [vmem:[#allocation2] sm:$0x3] }
  0x8c   :  { %599 = vmatmul.mubr.bf16.vlgmr.msra.gmra.mrb[4].mxu0 %v230_v49 }
  0x8d   :  { %1544 = vmatpush3.bf16.msra.mxu0 %v1649_v48  ;;  %638 = vmatprep.mubr.bf16.mxu0 %v229_v51 }
  0x8e   :  { %1545 = vmatprep.subr.bf16.mxu0 %v1650_v50  ;;  %v1423_v50 = vld [vmem:[%s2042_s2] ss:$0 sm:$0xff] }
  0x91   :  { %1546 = vmatpush3.bf16.msra.mxu0 %v1651_v52 }
  0x92   :  { %1547 = vmatprep.subr.bf16.mxu0 %v1652_v53  ;;  %v1696_v53 = vld [vmem:[#allocation9] ss:$8 sps:$4 sm:$0xff]  }
  0x95   :  { %1548 = vmatpush3.bf16.msra.mxu0 %v1653_v54 }
  0x96   :  { %1549 = vmatprep.subr.bf16.mxu0 %v1654_v55  ;;  %v1701_v55 = vld [vmem:[#allocation9 + $0x14] ss:$8 sps:$4 sm:$0xff]  }
  0x99   :  { %1550 = vmatpush3.bf16.msra.mxu0 %v1655_v56  ;;  %v1699_v56 = vld [vmem:[#allocation9 + $0x10] ss:$8 sps:$4 sm:$0xff]  }
  0x9a   :  { %1551 = vmatprep.subr.bf16.mxu0 %v1656_v57  ;;  %v1704_v57 = vld [vmem:[#allocation9 + $0x24] ss:$8 sps:$4 sm:$0xff]  }
  0x9d   :  { %1552 = vmatpush3.bf16.msra.mxu0 %v1657_v58  ;;  %v1702_v58 = vld [vmem:[#allocation9 + $0x20] ss:$8 sps:$4 sm:$0xff]  }
  0x9e   :  { %1553 = vmatprep.subr.bf16.mxu0 %v1658_v59  ;;  %v1707_v59 = vld [vmem:[#allocation9 + $0x34] ss:$8 sps:$4 sm:$0xff]  }
  0xa1   :  { %1554 = vmatpush3.bf16.msra.mxu0 %v1659_v60  ;;  %v1705_v60 = vld [vmem:[#allocation9 + $0x30] ss:$8 sps:$4 sm:$0xff]  }
  0xa2   :  { %1555 = vmatprep.subr.bf16.mxu0 %v1660_v61  ;;  %v1710_v61 = vld [vmem:[#allocation9 + $0x44] ss:$8 sps:$4 sm:$0xff]  }
  0xa5   :  { %1556 = vmatpush3.bf16.msra.mxu0 %v1661_v62  ;;  %v1708_v62 = vld [vmem:[#allocation9 + $0x40] ss:$8 sps:$4 sm:$0xff]  }
  0xa6   :  { %1557 = vmatprep.subr.bf16.mxu0 %v1662_v63  ;;  %v1713_v63 = vld [vmem:[#allocation9 + $0x54] ss:$8 sps:$4 sm:$0xff]  }
  0xa9   :  { %1558 = vmatpush3.bf16.msra.mxu0 %v1663_v0  ;;  %v1711_v0 = vld [vmem:[#allocation9 + $0x50] ss:$8 sps:$4 sm:$0xff]  }
  0xaa   :  { %1574 = vmatprep.subr.bf16.mxu0 %v1905_v4 }
  0xac   :  { %639 = vmatmul.mubr.bf16.vlgmr.msra.gmra.mrb[8].mxu0 %v215_v1  ;;  %v1716_v1 = vld [vmem:[#allocation9 + $0x64] ss:$8 sps:$4 sm:$0xff]  }
  0xad   :  { %1575 = vmatpush3.bf16.msra.mxu0 %v1667_v5  ;;  %1590 = vmatprep.mubr.msk.bf16.mxu0 %vm1907_vm0, %v1905_v4  ;;  %v1722_v5 = vld [vmem:[#allocation9 + $0x84] ss:$8 sps:$4 sm:$0xff]  }
  0xae   :  { %1576 = vmatprep.subr.bf16.mxu0 %v1905_v4 }
  0xb1   :  { %1577 = vmatpush3.bf16.msra.mxu0 %v1671_v9  ;;  %v1723_v9 = vld [vmem:[#allocation9 + $0x90] ss:$8 sps:$4 sm:$0xff]  }
  0xb2   :  { %1578 = vmatprep.subr.bf16.mxu0 %v1905_v4 }
  0xb5   :  { %1579 = vmatpush3.bf16.msra.mxu0 %v1675_v13  ;;  %v1731_v13 = vld [vmem:[#allocation9 + $0xb4] ss:$8 sps:$4 sm:$0xff]  }
  0xb6   :  { %1580 = vmatprep.subr.bf16.mxu0 %v1905_v4 }
  0xb9   :  { %1581 = vmatpush3.bf16.msra.mxu0 %v1679_v16  ;;  %v1732_v16 = vld [vmem:[#allocation9 + $0xc0] ss:$8 sps:$4 sm:$0xff]  }
  0xba   :  { %1582 = vmatprep.subr.bf16.mxu0 %v1905_v4 }
  0xbd   :  { %1583 = vmatpush3.bf16.msra.mxu0 %v1683_v19  ;;  %v1740_v19 = vld [vmem:[#allocation9 + $0xe4] ss:$8 sps:$4 sm:$0xff]  }
  0xbe   :  { %1584 = vmatprep.subr.bf16.mxu0 %v1905_v4 }
  0xc1   :  { %1585 = vmatpush3.bf16.msra.mxu0 %v1687_v22  ;;  %v1741_v22 = vld [vmem:[#allocation9 + $0xf0] ss:$8 sps:$4 sm:$0xff]  }
  0xc2   :  { %1586 = vmatprep.subr.bf16.mxu0 %v1905_v4 }
  0xc5   :  { %1587 = vmatpush3.bf16.msra.mxu0 %v1691_v25  ;;  %v693_v25 = vld [vmem:[%s2044_s4] sm:$0x7] }
  0xc6   :  { %1588 = vmatprep.subr.bf16.mxu0 %v1905_v4  ;;  %v1717_v4 = vld [vmem:[#allocation9 + $0x70] ss:$8 sps:$4 sm:$0xff]   ;;  %v698_v28 = vrot.slane %v693_v25, %v697_v24 }
  0xc9   :  { %1589 = vmatpush3.bf16.msra.mxu0 %v1695_v29  ;;  %v702_v29 = vrot.slane %v693_v25, %v701_v26 }
 0x13f   :  { %v1515_v31 = vpop.f32.mrb[0].mxu0 }
 0x140   :  { %v1516_v32 = vpop.f32.mrb[1].mxu0 }
 0x141   :  { %v1517_v33 = vadd.f32 %v1516_v32, %v1515_v31  ;;  %v1518_v34 = vpop.f32.mrb[2].mxu0 }
 0x142   :  { %v1519_v35 = vpop.f32.mrb[3].mxu0 }
 0x15f   :  { %v1537_v36 = vpop.f32.mrb[4].mxu0 }
 0x160   :  { %v1538_v37 = vpop.f32.mrb[5].mxu0 }
 0x161   :  { %v1539_v38 = vadd.f32 %v1538_v37, %v1537_v36  ;;  %v1540_v39 = vpop.f32.mrb[6].mxu0 }
 0x162   :  { %v1541_v40 = vpop.f32.mrb[7].mxu0 }
 0x163   :  { %v601_v41 = vadd.f32 %v1539_v38, %v1517_v33 }
 0x17f   :  { %v1559_v42 = vpop.f32.mrb[8].mxu0 }
 0x180   :  { %v1560_v43 = vpop.f32.mrb[9].mxu0 }
 0x181   :  { %v1561_v44 = vadd.f32 %v1560_v43, %v1559_v42  ;;  %v1562_v45 = vpop.f32.mrb[10].mxu0  ;;  %v1744_v43 = vld [vmem:[#allocation9 + $0x100] ss:$8 sps:$4 sm:$0xff]  }
 0x182   :  { %v1563_v47 = vpop.f32.mrb[11].mxu0  ;;  %v1749_v45 = vld [vmem:[#allocation9 + $0x114] ss:$8 sps:$4 sm:$0xff]  }
 0x183   :  { %v641_v48 = vadd.f32 %v1561_v44, %v601_v41  ;;  %v1752_v47 = vld [vmem:[#allocation9 + $0x124] ss:$8 sps:$4 sm:$0xff]  }
 0x185   :  { %v646_v49 = vadd.f32 %v641_v48, %v86_v46  ;;  %v1747_v46 = vld [vmem:[#allocation9 + $0x110] ss:$8 sps:$4 sm:$0xff]   ;;  %v1750_v48 = vld [vmem:[#allocation9 + $0x120] ss:$8 sps:$4 sm:$0xff]  }
 0x187   :  { %647 = vst [vmem:[#allocation2] sm:$0x3] %v646_v49  ;;  %v1755_v49 = vld [vmem:[#allocation9 + $0x134] ss:$8 sps:$4 sm:$0xff]  }
 0x18e   :  { %v651_v51 = vld [vmem:[#allocation2] sm:$0x3] }
 0x18f   :  { %v659_v52 = vadd.f32 %v1423_v50, %v651_v51  ;;  %v1753_v50 = vld [vmem:[#allocation9 + $0x130] ss:$8 sps:$4 sm:$0xff]   ;;  %v1758_v51 = vld [vmem:[#allocation9 + $0x144] ss:$8 sps:$4 sm:$0xff]  }
 0x191   :  { %v660_v54 = vpack.c.bf16 %v659_v52, %v659_v52  ;;  %v1756_v52 = vld [vmem:[#allocation9 + $0x140] ss:$8 sps:$4 sm:$0xff]  }
 0x193   :  { %871 = vmatmul.mubr.bf16.vlgmr.msra.gmra.mrb[0].mxu1 %v660_v54  ;;  %1591 = vmatmul.mubr.bf16.vlgmr.msra.gmra.mrb[12].mxu0 %v660_v54  ;;  %v1761_v54 = vld [vmem:[#allocation9 + $0x154] ss:$8 sps:$4 sm:$0xff]  }
 0x194   :  { %1226 = vmatpush1.bf16.msra.mxu1 %v1696_v53  ;;  %v705_v53 = vsub.s32 2, %v1998_v11 }
 0x195   :  { %1227 = vmatprep.subr.bf16.mxu1 %v1701_v55  ;;  %v1759_v55 = vld [vmem:[#allocation9 + $0x150] ss:$8 sps:$4 sm:$0xff]  }
 0x198   :  { %1228 = vmatpush1.bf16.msra.mxu1 %v1699_v56  ;;  %v706_v56 = vrot.slane %v693_v25, %v705_v53 }
 0x199   :  { %1229 = vmatprep.subr.bf16.mxu1 %v1704_v57  ;;  %v1762_v57 = vld [vmem:[#allocation9 + $0x160] ss:$8 sps:$4 sm:$0xff]  }
 0x19c   :  { %1230 = vmatpush1.bf16.msra.mxu1 %v1702_v58 }
 0x19d   :  { %1231 = vmatprep.subr.bf16.mxu1 %v1707_v59  ;;  %v1767_v59 = vld [vmem:[#allocation9 + $0x174] ss:$8 sps:$4 sm:$0xff]  }
 0x1a0   :  { %1232 = vmatpush1.bf16.msra.mxu1 %v1705_v60  ;;  %v1765_v60 = vld [vmem:[#allocation9 + $0x170] ss:$8 sps:$4 sm:$0xff]  }
 0x1a1   :  { %1233 = vmatprep.subr.bf16.mxu1 %v1710_v61 }
 0x1a4   :  { %1234 = vmatpush1.bf16.msra.mxu1 %v1708_v62 }
 0x1a5   :  { %1235 = vmatprep.subr.bf16.mxu1 %v1713_v63  ;;  %v973_v63 = vld [vmem:[%s2046_s6] sm:$0x3]  ;;  %s1908_s6 = smov [#allocation11]  }
 0x1a6   :  { %s1364_s8 = sshll.u32 %s1908_s6, 4  ;;  %s1365_s8 = int_to_ptr.vmem [resolvable:$true] %s1364_s8 }
 0x1a7   :  { %s1864_s9 = scalar_lea.vmem %s1365_s8, 64  ;;  %p1869_p5 = scmp.lt.s32.totalorder %s1365_s8, %s1365_s8 }
 0x1a8   :  { %1236 = vmatpush1.bf16.msra.mxu1 %v1711_v0  ;;  %v982_v0 = vrot.slane %v973_v63, %v701_v26  ;;  %p1865_p4 = scmp.ne.s32.totalorder %s1365_s8, %s1864_s9  ;;  %p1870_p6 = scmp.lt.s32.totalorder %s1864_s9, %s1864_s9 }
 0x1a9   :  { %1237 = vmatprep.subr.bf16.mxu1 %v1716_v1 }
 0x1aa   :  { %p1871_p7 = por %p1870_p6, %p1869_p5 }
 0x1ac   :  { %1238 = vmatpush1.bf16.msra.mxu1 %v1714_v2  ;;  %p1872_p8 = pnand %p1871_p7, %p1865_p4 }
 0x1ad   :  { %1239 = vmatprep.subr.bf16.mxu1 %v1719_v3 }
 0x1b0   :  { %1240 = vmatpush1.bf16.msra.mxu1 %v1717_v4 }
 0x1b1   :  { %1241 = vmatprep.subr.bf16.mxu1 %v1722_v5 }
 0x1b4   :  { %1242 = vmatpush1.bf16.msra.mxu1 %v1720_v6 }
 0x1b5   :  { %1243 = vmatprep.subr.bf16.mxu1 %v1725_v8  ;;  %v978_v8 = vrot.slane %v973_v63, %v697_v24 }
 0x1b8   :  { %1244 = vmatpush1.bf16.msra.mxu1 %v1723_v9 }
 0x1b9   :  { %1245 = vmatprep.subr.bf16.mxu1 %v1728_v10 }
 0x1bc   :  { %1246 = vmatpush1.bf16.msra.mxu1 %v1726_v12 }
 0x1bd   :  { %1247 = vmatprep.subr.bf16.mxu1 %v1731_v13  ;;  %v1308_v13 = vand.u32 127, %v189_v7 }
 0x1c0   :  { %1248 = vmatpush1.bf16.msra.mxu1 %v1729_v14 }
 0x1c1   :  { %1249 = vmatprep.subr.bf16.mxu1 %v1734_v15 }
 0x1c4   :  { %1250 = vmatpush1.bf16.msra.mxu1 %v1732_v16  ;;  %v1309_v16 = vadd.s32 128, %v1308_v13 }
 0x1c5   :  { %1251 = vmatprep.subr.bf16.mxu1 %v1737_v17 }
 0x1c6   :  { %vm1339_vm1 = vcmp.lt.s32.totalorder %v1309_v16, 200  ;;  %vm1337_vm2 = vcmp.lt.s32.totalorder %v1309_v16, 168  ;;  %vm1335_vm3 = vcmp.lt.s32.totalorder %v1309_v16, 160 }
 0x1c8   :  { %1252 = vmatpush1.bf16.msra.mxu1 %v1735_v18 }
 0x1c9   :  { %1253 = vmatprep.subr.bf16.mxu1 %v1740_v19 }
 0x1cc   :  { %1254 = vmatpush1.bf16.msra.mxu1 %v1738_v20 }
 0x1cd   :  { %1255 = vmatprep.subr.bf16.mxu1 %v1743_v21 }
 0x1d0   :  { %1256 = vmatpush1.bf16.msra.mxu1 %v1741_v22 }
 0x1d1   :  { %1266 = vmatprep.subr.bf16.mxu1 %v1746_v23 }
 0x266   :  { %v872_v30 = vpop.f32.mrb[0].mxu1  ;;  %v913_v31 = vpop.f32.mrb[12].mxu0 }
 0x267   :  { %v873_v32 = vadd.f32 %v872_v30, %v698_v28  ;;  %v874_v33 = vpop.f32.mrb[1].mxu1  ;;  %v1592_v34 = vpop.f32.mrb[13].mxu0  ;;  %v914_v58 = vadd.f32 %v913_v31, %v706_v56 }
 0x268   :  { %v875_v35 = vadd.f32 %v874_v33, %v702_v29  ;;  %v876_v36 = vpop.f32.mrb[2].mxu1  ;;  %v916_v37 = vpop.f32.mrb[14].mxu0 }
 0x269   :  { %v919_v38 = vmax.f32 %v873_v32, 0.0  ;;  %v877_v39 = vpop.f32.mrb[3].mxu1  ;;  %v1593_v40 = vpop.f32.mrb[15].mxu0  ;;  %v921_v61 = vmax.f32 %v914_v58, 0.0 }
 0x26a   :  { %v920_v41 = vmax.f32 %v875_v35, 0.0 }
 0x26b   :  { %v922_v44 = vpack.c.bf16 %v919_v38, %v919_v38  ;;  %v924_v62 = vpack.c.bf16 %v921_v61, %v921_v61 }
 0x26c   :  { %v923_v42 = vpack.c.bf16 %v920_v41, %v920_v41 }
 0x26e   :  { %1257 = vmatprep.mubr.bf16.mxu1 %v923_v42 }
 0x26f   :  { %1258 = vmatmul.mubr.bf16.vlgmr.msra.gmra.mrb[4].mxu1 %v922_v44 }
 0x270   :  { %1267 = vmatpush1.bf16.msra.mxu1 %v1744_v43  ;;  %1298 = vmatprep.mubr.bf16.mxu1 %v1906_v27  ;;  %v1764_v27 = vld [vmem:[#allocation9 + $0x164] ss:$8 sps:$4 sm:$0xff]  }
 0x271   :  { %1268 = vmatprep.subr.bf16.mxu1 %v1749_v45 }
 0x274   :  { %1269 = vmatpush1.bf16.msra.mxu1 %v1747_v46 }
 0x275   :  { %1270 = vmatprep.subr.bf16.mxu1 %v1752_v47 }
 0x278   :  { %1271 = vmatpush1.bf16.msra.mxu1 %v1750_v48 }
 0x279   :  { %1272 = vmatprep.subr.bf16.mxu1 %v1755_v49 }
 0x27c   :  { %1273 = vmatpush1.bf16.msra.mxu1 %v1753_v50 }
 0x27d   :  { %1274 = vmatprep.subr.bf16.mxu1 %v1758_v51 }
 0x280   :  { %1275 = vmatpush1.bf16.msra.mxu1 %v1756_v52 }
 0x281   :  { %1276 = vmatprep.subr.bf16.mxu1 %v1761_v54 }
 0x284   :  { %1277 = vmatpush1.bf16.msra.mxu1 %v1759_v55 }
 0x285   :  { %1278 = vmatprep.subr.bf16.mxu1 %v1764_v27 }
 0x288   :  { %1279 = vmatpush1.bf16.msra.mxu1 %v1762_v57 }
 0x289   :  { %1280 = vmatprep.subr.bf16.mxu1 %v1767_v59 }
 0x28c   :  { %1281 = vmatpush1.bf16.msra.mxu1 %v1765_v60 }
 0x28f   :  { %1299 = vmatmul.mubr.bf16.vlgmr.msra.gmra.mrb[4].mxu1 %v924_v62 }
 0x362   :  { %v1300_v1 = vpop.f32.mrb[4].mxu1 }
 0x363   :  { %v1302_v2 = vpop.f32.mrb[5].mxu1  ;;  %v1594_v9 = vadd.f32 %v1300_v1, %v978_v8 }
 0x364   :  { %v1595_v3 = vadd.f32 %v1302_v2, %v982_v0  ;;  %v1304_v4 = vpop.f32.mrb[6].mxu1 }
 0x365   :  { %v1305_v5 = vpop.f32.mrb[7].mxu1 }
 0x366   :  { %v1497_v6 = vmul.f32 -1.442695, %v1595_v3  ;;  %v1331_v14 = vmax.f32 %v1595_v3, 0.0 }
 0x368   :  { %1768 = vpow2.f32 %v1497_v6  ;;  %v1333_v19 = vmin.f32 %v1331_v14, 1.0 }
 0x369   :  { %1770 = vtanh.f32 %v1595_v3 }
 0x36a   :  { %1772 = vtanh.f32 %v1594_v9  ;;  %v1341_v23 = vsel %vm1339_vm1, %v1333_v19, 0.0 }
 0x372   :  { %v1769_v10 = vpop.eup %1768 }
 0x373   :  { %v1323_v12 = vadd.f32 1.0, %v1769_v10  ;;  %v1771_v15 = vpop.eup %1770 }
 0x374   :  { %v1773_v17 = vpop.eup %1772  ;;  %v1313_v18 = vmul.f32 8.0, %v1771_v15 }
 0x375   :  { %1774 = vrcp.f32 %v1323_v12  ;;  %v1312_v20 = vmul.f32 8.0, %v1773_v17 }
 0x376   :  { %v1315_v22 = vadd.f32 8.0, %v1313_v18 }
 0x377   :  { %v1314_v24 = vadd.f32 8.0, %v1312_v20 }
 0x37f   :  { %v1775_v21 = vpop.eup %1774 }
 0x380   :  { %v1329_v11 = vadd.f32 1.0, %v1775_v21 }
 0x382   :  { %v1343_v25 = vsel %vm1337_vm2, %v1329_v11, %v1341_v23 }
 0x383   :  { %v1345_v26 = vsel %vm1335_vm3, %v1315_v22, %v1343_v25 }
 0x384   :  { %v1348_v7 = vcombine.low %v1314_v24, %v1345_v26 }
 0x386   :  { %1498 = vst.sshfl [vmem:[#allocation11] sm:$0x33 pattern:$0x76325410] %v1348_v7 }
 0x387   :  { %1875 = shalt.err (!%p1872_p8)
}
 0x388   :  { %s1876_s12 = scalar_lea.hbm %s2047_s7, 64 }
 0x389   :  { %p1877_p9 = scmp.ne.s32.totalorder %s2047_s7, %s1876_s12  ;;  %p1880_p10 = scmp.lt.u32.totalorder %s1876_s12, %s2047_s7 }
 0x38b   :  { %p1882_p11 = pnand %p1880_p10, %p1877_p9 }
 0x38d   :  { %1885 = shalt.err (!%p1882_p11)
}
 0x38e   :  { %1367 = dma.vmem_to_hbm [thread:$0]  %s1365_s8, 64, %s2047_s7, [#allocation5]  }
 0x38f   :  { %1892 = dma.done.wait [#allocation5], 64  }
 0x390   :  { %1893 = vsyncadd [#allocation5], 4294967232 }
 0x391   :  { %1371 = vsyncpa [#allocation4], 1 }
 0x392   :  { %1372 = vsyncpa [#allocation7], 1 }
 0x393   :  { %1373 = vsyncpa [#allocation10], 1 }
 0x394   :  { %1374 = vsyncpa [#allocation5], 1 }

</bundles_post_ra>
